<compile_context>
chip_gen: v6e
topology: v6e:2x2x1
jax: 0.10.0
libtpu: 0.0.40
codegen_flags: <defaults>
</compile_context>

<pallas_src>
import functools
import math

import jax
import jax.numpy as jnp
import numpy as np
from jax.experimental import pallas as pl
from jax.experimental.pallas import tpu as pltpu

LANES = 128
BM_MAX = 8192          # 8192 * 128 * 4B = 4 MiB f32 block (8 MiB double-buffered)
ACC_ROWS_MAX = 64      # resident accumulator rows -> up to 8 independent add chains


def _round_up(a, b):
    return (a + b - 1) // b * b


def _cdiv(a, b):
    return -(-a // b)


def _bce_with_logits(x, t_val):
    """Numerically stable BCEWithLogits vs a constant target (PyTorch formulation)."""
    x = x.astype(jnp.float32)
    softplus_neg_abs = jnp.log1p(jnp.exp(-jnp.abs(x)))
    if t_val == 1.0:
        return jnp.maximum(-x, 0.0) + softplus_neg_abs          # == softplus(-x)
    if t_val == 0.0:
        return jnp.maximum(x, 0.0) + softplus_neg_abs           # == softplus(x)
    return jnp.maximum(x, 0.0) - x * t_val + softplus_neg_abs


def _num_tensorcores():
    """2 TensorCores per chip on v7x only; v5e/v6e are single-TC (parallel split
    there would just waste one clamped overhang block)."""
    try:
        kind = jax.devices()[0].device_kind.lower()
    except Exception:
        return 1
    return 2 if ("7x" in kind or "v7" in kind or "tpu7" in kind) else 1


def _vmem_limit_bytes():
    """~3/4 of physical VMEM per TensorCore, capped at 64 MiB (v7x has 64 MiB/TC)."""
    cap = 0
    try:
        cap = int(getattr(pltpu.get_tpu_info(), "vmem_capacity_bytes", 0) or 0)
    except Exception:
        cap = 0
    if cap <= 0:
        cap = 64 * 1024 * 1024          # smallest per-TC capacity across generations
    return min((cap * 3) // 4, 64 * 1024 * 1024)


def _gan_loss_kernel(x_ref, out_ref, *, t_val, rows, bm, acc_rows, tiles_per_chunk):
    """Add the BCE-with-logits sum of one (bm, 128) block into an (acc_rows, 128)
    resident partial-sum block (output-resident across the reduction grid axis).

    x_ref:   VMEM (bm, LANES) logits block.
    out_ref: VMEM (acc_rows, LANES) f32 per-chunk partial sums.
    Static closure args: target label, valid rows, block rows, accumulator rows,
    reduction steps per parallel chunk.
    """
    c = pl.program_id(0)        # parallel chunk (one per TensorCore on v7x; 1 otherwise)
    i = pl.program_id(1)        # reduction step within the chunk

    @pl.when(i == 0)
    def _init():
        out_ref[...] = jnp.zeros_like(out_ref)

    per = _bce_with_logits(x_ref[...], t_val)          # (bm, LANES) f32

    def accumulate(vals):
        # (bm,128) -> (bm//acc, acc, 128) splits the sublane dim at vreg boundaries
        # (acc is a multiple of 8), so the axis-0 sum is acc/8 independent chains of
        # bm//acc vector adds into the resident accumulator -- no single serial
        # latency chain, pure VPU work.
        out_ref[...] += vals.reshape(bm // acc_rows, acc_rows, LANES).sum(axis=0)

    base_row = (c * tiles_per_chunk + i) * bm          # unclamped global row offset
    is_ragged = base_row + bm > rows                   # last partial / clamped overhang

    @pl.when(jnp.logical_not(is_ragged))
    def _fast():
        accumulate(per)

    @pl.when(is_ragged)
    def _masked():
        # (bm, 1) iota broadcast across lanes; jnp.where is a true select, so NaN/Inf
        # coming from unspecified out-of-bounds rows cannot leak into the sum.
        # (Do NOT change this to a multiply-by-zero mask.)
        row_ids = base_row + jax.lax.broadcasted_iota(jnp.int32, (bm, 1), 0)
        accumulate(jnp.where(row_ids < rows, per, 0.0))


@functools.partial(jax.jit,
                   static_argnames=("target_is_real", "real_label_val", "fake_label_val"))
def gan_loss(x, target_is_real, real_label_val=1.0, fake_label_val=0.0):
    """Equivalent of GANLoss.forward(input, target_is_real) -> scalar mean loss."""
    t_val = float(real_label_val) if target_is_real else float(fake_label_val)
    n = x.size                                   # static python int

    flat = x.reshape(-1)
    main = (n // LANES) * LANES                  # lane-aligned prefix
    tail = n - main                              # < 128 leftover elements

    # Tail: negligible work, handled directly in XLA.  This avoids the full-tensor
    # jnp.pad copy (3x HBM traffic) the previous revision paid for unaligned shapes.
    tail_sum = jnp.float32(0.0)
    if tail:
        tail_sum = jnp.sum(_bce_with_logits(flat[main:], t_val), dtype=jnp.float32)
    if main == 0:                                # tiny input: nothing for the kernel
        return tail_sum / n

    rows = main // LANES
    # Pure bitcast when n % 128 == 0 (typical conv-logit shapes).
    x2d = flat[:main].reshape(rows, LANES)

    # dtype-aware sublane rounding: f32 -> 8, bf16 -> 16, int8/fp8 -> 32 (avoids a
    # packed-layout relayout for sub-32-bit inputs; cast to f32 happens in-kernel).
    sub = {1: 32, 2: 16}.get(jnp.dtype(x.dtype).itemsize, 8)
    bm = min(BM_MAX, _round_up(rows, sub))
    num_tiles = _cdiv(rows, bm)

    nc = max(1, min(_num_tensorcores(), num_tiles))
    tiles_per_chunk = _cdiv(num_tiles, nc)
    acc_rows = math.gcd(bm, ACC_ROWS_MAX)        # in {8, 16, 32, 64}

    kernel = functools.partial(_gan_loss_kernel, t_val=t_val, rows=rows, bm=bm,
                               acc_rows=acc_rows, tiles_per_chunk=tiles_per_chunk)

    if nc == 1:
        x_index = lambda c, i: (i, 0)            # static arithmetic, no clamp
    else:
        # At most one clamped overhang block in the last chunk; it re-reads the final
        # valid block and its contribution is masked to exactly zero in-kernel.
        x_index = lambda c, i: (jnp.minimum(c * tiles_per_chunk + i, num_tiles - 1), 0)

    # TODO(synk): optionally sweep pipeline_mode=pl.Buffered(3) on the input spec for
    # v7x if xprof shows exposed DMA between reduction steps.
    partials = pl.pallas_call(
        kernel,
        out_shape=jax.ShapeDtypeStruct((nc * acc_rows, LANES), jnp.float32),
        grid_spec=pltpu.PrefetchScalarGridSpec(
            num_scalar_prefetch=0,
            grid=(nc, tiles_per_chunk),
            in_specs=[pl.BlockSpec((bm, LANES), x_index)],
            out_specs=pl.BlockSpec((acc_rows, LANES), lambda c, i: (c, 0)),
        ),
        compiler_params=pltpu.CompilerParams(
            dimension_semantics=("parallel", "arbitrary"),
            vmem_limit_bytes=_vmem_limit_bytes(),
        ),
    )(x2d)

    total = jnp.sum(partials, dtype=jnp.float32) + tail_sum   # tiny XLA reduce
    return total / n


def _reference_gan_loss(x, target_is_real, real_label_val=1.0, fake_label_val=0.0):
    t = real_label_val if target_is_real else fake_label_val
    return jnp.mean(_bce_with_logits(x.reshape(-1), t))


if __name__ == "__main__":
    key = jax.random.PRNGKey(0)
    k0, k1, k2 = jax.random.split(key, 3)

    # Discriminator-style logits: NCHW (batch=2, channels=4, spatial=16x16).
    logits = jax.random.normal(k0, (2, 4, 16, 16), dtype=jnp.float32) * 3.0
    loss_real = jax.block_until_ready(gan_loss(logits, True))
    loss_fake = jax.block_until_ready(gan_loss(logits, False))
    np.testing.assert_allclose(np.array(loss_real),
                               np.array(_reference_gan_loss(logits, True)),
                               rtol=1e-5, atol=1e-5)
    np.testing.assert_allclose(np.array(loss_fake),
                               np.array(_reference_gan_loss(logits, False)),
                               rtol=1e-5, atol=1e-5)

    # Larger lane-aligned case: rows=2400 (non power-of-2 -> acc_rows=32).
    logits2 = jax.random.normal(k1, (4, 8, 100, 96), dtype=jnp.float32) * 2.0
    l2 = jax.block_until_ready(gan_loss(logits2, True))
    np.testing.assert_allclose(np.array(l2),
                               np.array(_reference_gan_loss(logits2, True)),
                               rtol=1e-5, atol=1e-5)

    # Non-128-multiple numel (1050 = 8*128 + 26): aligned prefix through the kernel,
    # the 26-element tail folded in with XLA -- no jnp.pad copy.
    logits3 = jax.random.normal(k2, (3, 7, 50), dtype=jnp.float32) * 2.5
    l3 = jax.block_until_ready(gan_loss(logits3, False))
    np.testing.assert_allclose(np.array(l3),
                               np.array(_reference_gan_loss(logits3, False)),
                               rtol=1e-5, atol=1e-5)

    # bf16 logits path (16-sublane rounding, in-kernel cast to f32).
    logits_bf16 = (jax.random.normal(k0, (2, 4, 16, 16), dtype=jnp.float32) * 3.0
                   ).astype(jnp.bfloat16)
    lb = jax.block_until_ready(gan_loss(logits_bf16, True))
    np.testing.assert_allclose(np.array(lb),
                               np.array(_reference_gan_loss(logits_bf16, True)),
                               rtol=1e-4, atol=1e-4)

    print("KERNEL_OK")
</pallas_src>

<mosaic_0001>
module attributes {stable_mosaic.version = 11 : i64} {
  func.func @_gan_loss_kernel(%arg0: i32, %arg1: i32, %arg2: memref<16x128xf32, #tpu.memory_space<vmem>>, %arg3: memref<16x128xf32, #tpu.memory_space<vmem>>) attributes {dimension_semantics = [#tpu.dimension_semantics<parallel>, #tpu.dimension_semantics<arbitrary>], iteration_bounds = array<i64: 1, 1>, scalar_prefetch = 0 : i64, scratch_operands = 0 : i64, tpu.core_type = #tpu.core_type<tc>, window_params = [{transform_indices = @transform_0, window_bounds = array<i64: 16, 128>}, {transform_indices = @transform_1, window_bounds = array<i64: 16, 128>}]} {
    %c0_i32 = arith.constant 0 : i32
    %0 = arith.cmpi eq, %arg1, %c0_i32 : i32
    %1 = arith.extui %0 : i1 to i32
    %c0_i32_0 = arith.constant 0 : i32
    %2 = arith.cmpi ne, %1, %c0_i32_0 : i32
    scf.if %2 {
      %cst_8 = arith.constant 0.000000e+00 : f32
      %24 = vector.broadcast %cst_8 : f32 to vector<16x128xf32>
      %c0_9 = arith.constant 0 : index
      %c0_10 = arith.constant 0 : index
      %25 = vector.load %arg3[%c0_9, %c0_10] : memref<16x128xf32, #tpu.memory_space<vmem>>, vector<16x128xf32>
      tpu.vector_store %arg3[%c0_9, %c0_10], %24 {strides = array<i32>} : memref<16x128xf32, #tpu.memory_space<vmem>>, vector<16x128xf32>,
    } else {
    }
    %c0 = arith.constant 0 : index
    %c0_1 = arith.constant 0 : index
    %3 = vector.load %arg2[%c0, %c0_1] : memref<16x128xf32, #tpu.memory_space<vmem>>, vector<16x128xf32>
    %4 = math.absf %3 : vector<16x128xf32>
    %cst = arith.constant 0.000000e+00 : f32
    %5 = vector.broadcast %cst : f32 to vector<16x128xf32>
    %6 = arith.subf %5, %4 : vector<16x128xf32>
    %7 = math.exp %6 : vector<16x128xf32>
    %8 = math.log1p %7 : vector<16x128xf32>
    %cst_2 = arith.constant 0.000000e+00 : f32
    %9 = vector.broadcast %cst_2 : f32 to vector<16x128xf32>
    %10 = arith.subf %9, %3 : vector<16x128xf32>
    %cst_3 = arith.constant 0.000000e+00 : f32
    %11 = vector.broadcast %cst_3 : f32 to vector<16x128xf32>
    %12 = arith.maximumf %10, %11 : vector<16x128xf32>
    %13 = arith.addf %12, %8 : vector<16x128xf32>
    %c1_i32 = arith.constant 1 : i32
    %14 = arith.muli %arg0, %c1_i32 : i32
    %15 = arith.addi %14, %arg1 : i32
    %c16_i32 = arith.constant 16 : i32
    %16 = arith.muli %15, %c16_i32 : i32
    %c16_i32_4 = arith.constant 16 : i32
    %17 = arith.addi %16, %c16_i32_4 : i32
    %c16_i32_5 = arith.constant 16 : i32
    %18 = arith.cmpi sgt, %17, %c16_i32_5 : i32
    %true = arith.constant true
    %19 = arith.xori %18, %true : i1
    %20 = arith.extui %19 : i1 to i32
    %c0_i32_6 = arith.constant 0 : i32
    %21 = arith.cmpi ne, %20, %c0_i32_6 : i32
    scf.if %21 {
      %c0_8 = arith.constant 0 : index
      %c0_9 = arith.constant 0 : index
      %24 = vector.load %arg3[%c0_8, %c0_9] : memref<16x128xf32, #tpu.memory_space<vmem>>, vector<16x128xf32>
      %25 = vector.shape_cast %13 : vector<16x128xf32> to vector<1x16x128xf32>
      %cst_10 = arith.constant dense<0.000000e+00> : vector<16x128xf32>
      %26 = vector.multi_reduction <add>, %25, %cst_10 [0] : vector<1x16x128xf32> to vector<16x128xf32>
      %27 = arith.addf %24, %26 : vector<16x128xf32>
      %c0_11 = arith.constant 0 : index
      %c0_12 = arith.constant 0 : index
      %28 = vector.load %arg3[%c0_11, %c0_12] : memref<16x128xf32, #tpu.memory_space<vmem>>, vector<16x128xf32>
      tpu.vector_store %arg3[%c0_11, %c0_12], %27 {strides = array<i32>} : memref<16x128xf32, #tpu.memory_space<vmem>>, vector<16x128xf32>,
    } else {
    }
    %22 = arith.extui %18 : i1 to i32
    %c0_i32_7 = arith.constant 0 : i32
    %23 = arith.cmpi ne, %22, %c0_i32_7 : i32
    scf.if %23 {
      %24 = tpu.iota {dimensions = array<i32: 0>} : vector<16x1xi32>
      %25 = vector.broadcast %16 : i32 to vector<16x1xi32>
      %26 = arith.addi %25, %24 : vector<16x1xi32>
      %c16_i32_8 = arith.constant 16 : i32
      %27 = vector.broadcast %c16_i32_8 : i32 to vector<16x1xi32>
      %28 = arith.cmpi slt, %26, %27 : vector<16x1xi32>
      %cst_9 = arith.constant 0.000000e+00 : f32
      %29 = vector.shape_cast %28 : vector<16x1xi1> to vector<16x1xi1>
      %30 = vector.broadcast %29 : vector<16x1xi1> to vector<16x128xi1>
      %31 = vector.broadcast %cst_9 : f32 to vector<16x128xf32>
      %32 = arith.select %30, %13, %31 : vector<16x128xi1>, vector<16x128xf32>
      %c0_10 = arith.constant 0 : index
      %c0_11 = arith.constant 0 : index
      %33 = vector.load %arg3[%c0_10, %c0_11] : memref<16x128xf32, #tpu.memory_space<vmem>>, vector<16x128xf32>
      %34 = vector.shape_cast %32 : vector<16x128xf32> to vector<1x16x128xf32>
      %cst_12 = arith.constant dense<0.000000e+00> : vector<16x128xf32>
      %35 = vector.multi_reduction <add>, %34, %cst_12 [0] : vector<1x16x128xf32> to vector<16x128xf32>
      %36 = arith.addf %33, %35 : vector<16x128xf32>
      %c0_13 = arith.constant 0 : index
      %c0_14 = arith.constant 0 : index
      %37 = vector.load %arg3[%c0_13, %c0_14] : memref<16x128xf32, #tpu.memory_space<vmem>>, vector<16x128xf32>
      tpu.vector_store %arg3[%c0_13, %c0_14], %36 {strides = array<i32>} : memref<16x128xf32, #tpu.memory_space<vmem>>, vector<16x128xf32>,
    } else {
    }
    return
  }
  func.func @transform_0(%arg0: i32, %arg1: i32) -> (i32, i32) {
    %c0_i32 = arith.constant 0 : i32
    %c0_i32_0 = arith.constant 0 : i32
    return %arg1, %c0_i32 : i32, i32
  }
  func.func @transform_1(%arg0: i32, %arg1: i32) -> (i32, i32) {
    %c0_i32 = arith.constant 0 : i32
    %c0_i32_0 = arith.constant 0 : i32
    return %arg0, %c0_i32 : i32, i32
  }
}

</mosaic_0001>

<bundles_post_ra>
// kernel: gan_loss.1
= control target key start
LH: loop header
LB: loop body
LE: loop exit
PB: predicated region body
PF: predicated region fallthrough
CT: control target
= control target key end

     0   :  { %s124_s0 = inlined_call_operand.vmem [shape: f32[16,128], index: 0, kind: input, shape index: {}]   ;;  %s125_s1 = inlined_call_operand.vmem [shape: f32[16,128], index: 1, kind: output, shape index: {}]  }
   0x1   :  { %v14_v0 = vld [vmem:[%s124_s0] sm:$0xff]  ;;  %v15_v1 = vld [vmem:[%s124_s0 + $0x8] sm:$0xff] }
   0x2   :  { %v16_v2 = vand.u32 2147483647, %v14_v0  ;;  %v17_v3 = vand.u32 2147483647, %v15_v1  ;;  %v42_v16 = vsub.f32 0.0, %v14_v0  ;;  %v43_v19 = vsub.f32 0.0, %v15_v1 }
   0x4   :  { %v18_v4 = vsub.f32 0.0, %v16_v2  ;;  %v19_v5 = vsub.f32 0.0, %v17_v3  ;;  %v44_v22 = vmax.f32 %v42_v16, 0.0  ;;  %v45_v26 = vmax.f32 %v43_v19, 0.0 }
   0x6   :  { %v20_v6 = vmul.f32 1.442695, %v18_v4  ;;  %v22_v7 = vmul.f32 1.442695, %v19_v5 }
   0x8   :  { %94 = vpow2.f32 %v20_v6 }
   0x9   :  { %96 = vpow2.f32 %v22_v7 }
  0x15   :  { %v95_v8 = vpop.eup %94 }
  0x16   :  { %v97_v9 = vpop.eup %96  ;;  %v24_v10 = vadd.f32 1.0, %v95_v8  ;;  %v27_v12 = vmul.f32 -0.5, %v95_v8  ;;  %v30_v15 = vand.u32 2147483647, %v95_v8 }
  0x17   :  { %v33_v11 = vadd.f32 1.0, %v97_v9  ;;  %v36_v13 = vmul.f32 -0.5, %v97_v9  ;;  %v39_v18 = vand.u32 2147483647, %v97_v9 }
  0x18   :  { %98 = vlog2.f32 %v24_v10  ;;  %v28_v14 = vadd.f32 1.0, %v27_v12  ;;  %vm31_vm0 = vcmp.lt.f32.partialorder %v30_v15, 0.0004427343 }
  0x19   :  { %100 = vlog2.f32 %v33_v11  ;;  %v37_v17 = vadd.f32 1.0, %v36_v13  ;;  %vm40_vm1 = vcmp.lt.f32.partialorder %v39_v18, 0.0004427343 }
  0x1a   :  { %v29_v20 = vmul.f32 %v95_v8, %v28_v14 }
  0x1b   :  { %v38_v23 = vmul.f32 %v97_v9, %v37_v17 }
  0x25   :  { %v99_v21 = vpop.eup %98 }
  0x26   :  { %v101_v24 = vpop.eup %100  ;;  %v26_v25 = vmul.f32 0.6931472, %v99_v21 }
  0x27   :  { %v35_v27 = vmul.f32 0.6931472, %v101_v24 }
  0x28   :  { %v32_v28 = vsel %vm31_vm0, %v29_v20, %v26_v25 }
  0x29   :  { %v46_v29 = vadd.f32 %v44_v22, %v32_v28  ;;  %v41_v30 = vsel %vm40_vm1, %v38_v23, %v35_v27 }
  0x2a   :  { %v47_v31 = vadd.f32 %v45_v26, %v41_v30 }
  0x2b   :  { %62 = vst [vmem:[%s125_s1] sm:$0xff] %v46_v29 }
  0x2c   :  { %63 = vst [vmem:[%s125_s1 + $0x8] sm:$0xff] %v47_v31 }

</bundles_post_ra>
